<compile_context>
chip_gen: v7x
topology: tpu7x:2x2x1
jax: 0.10.0
libtpu: 0.0.40
codegen_flags: <defaults>
</compile_context>

<pallas_src>
import jax
import jax.numpy as jnp
from jax.experimental import pallas as pl
from jax.experimental.pallas import tpu as pltpu

LANES = 128
SUBLANES = 8
# ~2 MiB per block (see header comment for the VMEM / roofline reasoning).
_TARGET_BLOCK_BYTES = 2 * 1024 * 1024


# ---------------------------------------------------------------------------
# Pallas kernel
# ---------------------------------------------------------------------------
def _pe_add_kernel(x_ref, pos_ref, o_ref):
    # x_ref, pos_ref, o_ref: (block_rows, 128) -- identical 8x128-dense layout.
    # Pure VPU add with unmasked, lane-dense stores.
    o_ref[...] = x_ref[...] + pos_ref[...]


# ---------------------------------------------------------------------------
# sinusoid table (init-time buffer, plain JAX — matches register_buffer)
# ---------------------------------------------------------------------------
def sinusoid_table(n_position, d_hid, dtype=jnp.float32):
    pos = jnp.arange(n_position, dtype=jnp.float32)[:, None]          # (n_pos, 1)
    idx = jnp.arange(d_hid)[None, :]                                   # (1, d_hid)
    angle = pos / jnp.power(10000.0,
                            (2 * (idx // 2)).astype(jnp.float32) / d_hid)
    # even columns -> sin, odd columns -> cos
    table = jnp.where(idx % 2 == 0, jnp.sin(angle), jnp.cos(angle))    # (n_pos, d_hid)
    # Pre-cast once at init; note: for bf16 activations this accumulates in
    # bf16 (PyTorch keeps the buffer f32 and promotes) -> ~1 ulp bf16 delta.
    return table.astype(dtype)


def _choose_block_rows(n_rows, itemsize):
    """Largest row-block: multiple of 8 sublanes, <= ~2 MiB, capped at n_rows."""
    max_rows = (_TARGET_BLOCK_BYTES // (LANES * itemsize)) // SUBLANES * SUBLANES
    max_rows = max(max_rows, SUBLANES)
    if n_rows <= max_rows:
        return n_rows          # single chunk: block equals the full row extent
    return max_rows            # multiple of 8 -> legal tiled (8,128) block


# ---------------------------------------------------------------------------
# forward wrapper
# ---------------------------------------------------------------------------
@jax.jit
def positional_encoding_forward(x, pos_table):
    """x: (B, T, D); pos_table: (n_position, D) in x.dtype.
    Returns x + pos_table[None, :T, :]."""
    B, T, D = x.shape
    L = T * D
    itemsize = jnp.dtype(x.dtype).itemsize

    # ---- lane/sublane-dense view: per-batch (T, D) slab -> (R, 128) tiles ---
    L_lane = pl.cdiv(L, LANES) * LANES
    R = L_lane // LANES
    block_rows = _choose_block_rows(R, itemsize)
    num_chunks = pl.cdiv(R, block_rows)
    R_pad = num_chunks * block_rows
    L_pad = R_pad * LANES

    x_flat = x.reshape(B, L)
    pos_flat = pos_table[:T].astype(x.dtype).reshape(1, L)   # tiny vs. activation
    if L_pad != L:
        # TODO(synk): ragged tails take a padded copy here; a masked-store
        # kernel would avoid the extra HBM round-trip for the pad bytes.
        x_flat = jnp.pad(x_flat, ((0, 0), (0, L_pad - L)))
        pos_flat = jnp.pad(pos_flat, ((0, 0), (0, L_pad - L)))
    x_tiles = x_flat.reshape(B, R_pad, LANES)
    pos_tiles = pos_flat.reshape(R_pad, LANES)

    # Grid: row-chunk outer, batch inner.  pos's block index depends only on
    # the chunk axis, so its block is re-DMA'd only when the chunk changes.
    grid = (num_chunks, B)

    out_tiles = pl.pallas_call(
        _pe_add_kernel,
        out_shape=jax.ShapeDtypeStruct((B, R_pad, LANES), x.dtype),
        grid=grid,
        in_specs=[
            pl.BlockSpec((None, block_rows, LANES), lambda r, b: (b, r, 0)),
            pl.BlockSpec((block_rows, LANES), lambda r, b: (r, 0)),
        ],
        out_specs=pl.BlockSpec((None, block_rows, LANES), lambda r, b: (b, r, 0)),
        # Write the sum back into the activation slab's HBM buffer.
        input_output_aliases={0: 0},
        compiler_params=pltpu.CompilerParams(
            # Both grid axes are fully independent (elementwise op): lets the
            # two v7x TensorCores split the grid; harmless on v5e/v6e.
            dimension_semantics=("parallel", "parallel"),
            vmem_limit_bytes=32 * 1024 * 1024,
        ),
    )(x_tiles, pos_tiles)

    out = out_tiles.reshape(B, L_pad)
    if L_pad != L:
        out = out[:, :L]
    return out.reshape(B, T, D)


# ---------------------------------------------------------------------------
# main
# ---------------------------------------------------------------------------
if __name__ == "__main__":
    d_hid = 32          # d_word_vec / d_model
    n_position = 200
    B, T = 2, 8

    key = jax.random.PRNGKey(0)
    x = jax.random.normal(key, (B, T, d_hid), jnp.float32)

    pos_table = sinusoid_table(n_position, d_hid, dtype=x.dtype)      # (200, 32)

    out = positional_encoding_forward(x, pos_table)
    out = jax.block_until_ready(out)

    # sanity check against the plain-JAX reference of the PyTorch forward
    ref = x + pos_table[None, :T, :]
    assert out.shape == (B, T, d_hid)
    assert bool(jnp.all(jnp.isfinite(out)))
    assert bool(jnp.allclose(out, ref, atol=1e-6, rtol=1e-6))

    print("KERNEL_OK")
</pallas_src>

<mosaic_0001>
module attributes {stable_mosaic.version = 11 : i64} {
  func.func @_pe_add_kernel(%arg0: i32, %arg1: i32, %arg2: memref<1x2x128xf32, #tpu.memory_space<vmem>>, %arg3: memref<2x128xf32, #tpu.memory_space<vmem>>, %arg4: memref<1x2x128xf32, #tpu.memory_space<vmem>>) attributes {dimension_semantics = [#tpu.dimension_semantics<parallel>, #tpu.dimension_semantics<parallel>], iteration_bounds = array<i64: 1, 2>, scalar_prefetch = 0 : i64, scratch_operands = 0 : i64, tpu.core_type = #tpu.core_type<tc>, window_params = [{transform_indices = @transform_0, window_bounds = array<i64: 1, 2, 128>}, {transform_indices = @transform_1, window_bounds = array<i64: 2, 128>}, {transform_indices = @transform_2, window_bounds = array<i64: 1, 2, 128>}]} {
    %c0 = arith.constant 0 : index
    %c0_0 = arith.constant 0 : index
    %c0_1 = arith.constant 0 : index
    %0 = vector.load %arg2[%c0, %c0_0, %c0_1] : memref<1x2x128xf32, #tpu.memory_space<vmem>>, vector<1x2x128xf32>
    %1 = vector.shape_cast %0 : vector<1x2x128xf32> to vector<2x128xf32>
    %c0_2 = arith.constant 0 : index
    %c0_3 = arith.constant 0 : index
    %2 = vector.load %arg3[%c0_2, %c0_3] : memref<2x128xf32, #tpu.memory_space<vmem>>, vector<2x128xf32>
    %3 = arith.addf %1, %2 : vector<2x128xf32>
    %c0_4 = arith.constant 0 : index
    %c0_5 = arith.constant 0 : index
    %c0_6 = arith.constant 0 : index
    %4 = vector.load %arg4[%c0_4, %c0_5, %c0_6] : memref<1x2x128xf32, #tpu.memory_space<vmem>>, vector<1x2x128xf32>
    %5 = vector.shape_cast %4 : vector<1x2x128xf32> to vector<2x128xf32>
    %6 = vector.shape_cast %3 : vector<2x128xf32> to vector<1x2x128xf32>
    tpu.vector_store %arg4[%c0_4, %c0_5, %c0_6], %6 {strides = array<i32>} : memref<1x2x128xf32, #tpu.memory_space<vmem>>, vector<1x2x128xf32>,
    return
  }
  func.func @transform_0(%arg0: i32, %arg1: i32) -> (i32, i32, i32) {
    %c0_i32 = arith.constant 0 : i32
    %c0_i32_0 = arith.constant 0 : i32
    return %arg1, %arg0, %c0_i32 : i32, i32, i32
  }
  func.func @transform_1(%arg0: i32, %arg1: i32) -> (i32, i32) {
    %c0_i32 = arith.constant 0 : i32
    %c0_i32_0 = arith.constant 0 : i32
    return %arg0, %c0_i32 : i32, i32
  }
  func.func @transform_2(%arg0: i32, %arg1: i32) -> (i32, i32, i32) {
    %c0_i32 = arith.constant 0 : i32
    %c0_i32_0 = arith.constant 0 : i32
    return %arg1, %arg0, %c0_i32 : i32, i32, i32
  }
}

</mosaic_0001>

<bundles_post_ra>
// kernel: positional_encoding_forward.1
= control target key start
LH: loop header
LB: loop body
LE: loop exit
PB: predicated region body
PF: predicated region fallthrough
CT: control target
= control target key end

     0   :  { %s354_s9 = smov 0   ;;  %s331_s10 = smov 0   ;;  %s368_s0 = inlined_call_operand.vmem [shape: f32[2,2,128], index: 0, kind: input, shape index: {}, may-alias: {0,2}]   ;;  %s369_s1 = inlined_call_operand.vmem [shape: f32[2,128], index: 1, kind: input, shape index: {}]   ;;  %s370_s2 = inlined_call_operand.vmem [shape: f32[2,2,128], index: 2, kind: output, shape index: {}, may-alias: {0,2}]  }
   0x1   :  { %s335_s11 = smov 0  }
   0x2 LB: > { %s21_s12 = sadd.s32 1, %s333_s10  ;;  %p286_p0 = scmp.ge.s32.totalorder %s337_s11, 1  ;;  %s337_s11 = sphi %s335_s11, %s12_s11   ;;  %s333_s10 = sphi %s331_s10, %s332_s10   ;;  %s329_s9 = sphi %s354_s9, %s371_s9  }
   0x3   : > { %p22_p1 = scmp.ge.s32.totalorder %s21_s12, 2  ;;  %p139_p2 = scmp.lt.s32.totalorder %s337_s11, 3 }
   0x5   : > { %s373_s12 = smov (%p22_p1, %s21_s12), 0  ;;  %p140_p3 = pnand %p286_p0, %p139_p2 }
   0x6   : > { %p169_p4 = scmp.lt.s32.totalorder (!%p140_p3), %s329_s9, 1  ;;  %v188_v0 = vld [vmem:[%s369_s1] sm:$0x3] (!%p140_p3) }
   0x7   : > { %143 = sbr.rel (%p140_p3) target bundleno = 21 (0x15), region = 28 }
   0xe   : > { %s375_s9 = smov (!%p169_p4, %s329_s9), 1 }
   0xf   : > { %s287_s13 = sshll.u32 %s375_s9, 1 }
  0x10   : > { %s175_s18 = scalar_lea.vmem %s368_s0, %s287_s13  ;;  %s186_s21 = scalar_lea.vmem %s370_s2, %s287_s13 }
  0x11   : > { %v187_v1 = vld [vmem:[%s175_s18] sm:$0x3] }
  0x12   : > { %v189_v2 = vadd.f32 %v188_v0, %v187_v1 }
  0x14   : > { %190 = vst [vmem:[%s186_s21] sm:$0x3] %v189_v2 }
  0x15 PF: > { %s12_s11 = sadd.s32 1, %s337_s11   ;;  %s371_s9 = smov %s333_s10 }
  0x16   : > { %p9_p5 = scmp.ge.s32.totalorder %s12_s11, 4   ;;  %s332_s10 = smov %s373_s12  }
  0x18   :  { %11 = sbr.rel (!%p9_p5) target bundleno = 2 (0x2), region = 61 }

</bundles_post_ra>
